<compile_context>
chip_gen: v6e
topology: v6e:2x2x1
jax: 0.10.0
libtpu: 0.0.40
codegen_flags: <defaults>
</compile_context>

<pallas_src>
import jax
import jax.numpy as jnp
from jax.experimental import pallas as pl
from jax.experimental.pallas import tpu as pltpu

# ----------------------------- small config -----------------------------
B = 2            # batch
IN_CH = 16       # in_channels
MODEL_CH = 128   # model_channels (hidden)
OUT_CH = 16      # out_channels
Z_CH = 32        # z_channels
SEQ = 16         # diff_seqlen
FREQ = 256       # frequency_embedding_size
HALF = FREQ // 2
OUT_PAD = 128    # lane-dense padded output width (sliced back to OUT_CH outside)


# ----------------------- single fused forward kernel -----------------------
def fused_decoder_kernel(t_ref, x_ref, w_in_ref, posb_ref,
                         w_t1_ref, b_t1_ref, w_t2_ref, b_t2_ref,
                         table_ref, w_f_ref, b_f_ref, o_ref):
    m = x_ref.shape[0]            # B*SEQ rows folded into the matmul M dim
    bsz = t_ref.shape[0]
    seq = m // bsz

    # ---- Timesteps(num_channels=256, flip_sin_to_cos=True, shift=0) ----
    # emb = [cos(t*f) | sin(t*f)], f_k = exp(-ln(1e4) * k / HALF)
    k = jax.lax.broadcasted_iota(jnp.int32, (1, HALF), 1).astype(jnp.float32)
    freqs = jnp.exp(k * (-jnp.log(jnp.float32(10000.0)) / HALF))        # (1, HALF)
    args = t_ref[...] * freqs                                           # (B, HALF)
    # lane-concat lands exactly on the 128-lane vreg boundary -> pure layout
    emb = jnp.concatenate([jnp.cos(args), jnp.sin(args)],
                          axis=-1).astype(jnp.bfloat16)                 # (B, FREQ)

    # ---- TimestepEmbedding: linear_1 -> SiLU -> linear_2 (one K=256 MXU pass) ----
    h1 = (jnp.dot(emb, w_t1_ref[...], preferred_element_type=jnp.float32)
          + b_t1_ref[...])
    h1 = h1 * jax.nn.sigmoid(h1)                                        # SiLU (f32)
    temb = (jnp.dot(h1.astype(jnp.bfloat16), w_t2_ref[...],
                    preferred_element_type=jnp.float32)
            + b_t2_ref[...])                                            # (B, C) f32

    # ---- input_proj + pre-tiled (pos-embed + bias), batch folded into M ----
    h = (jnp.dot(x_ref[...].astype(jnp.bfloat16), w_in_ref[...],
                 preferred_element_type=jnp.float32)
         + posb_ref[...])                                               # (B*SEQ, C)

    # TODO(synk): res_blocks(x, cond_embed(c), timestep_proj) would run here; the
    # reference passes an external (empty) module list, so this stage is identity.

    # ---- broadcast temb over its SEQ rows via a one-hot selection matmul (MXU) ----
    row = jax.lax.broadcasted_iota(jnp.int32, (m, bsz), 0)
    col = jax.lax.broadcasted_iota(jnp.int32, (m, bsz), 1)
    sel = jnp.logical_and(row >= col * seq,
                          row < (col + 1) * seq).astype(jnp.bfloat16)   # (M, B)
    temb_rows = jnp.dot(sel, temb.astype(jnp.bfloat16),
                        preferred_element_type=jnp.float32)             # (M, C)

    # ---- FinalLayer: LayerNorm(eps=1e-6, no affine) + scale/shift + linear ----
    mean = jnp.mean(h, axis=-1, keepdims=True)
    var = jnp.mean(jnp.square(h - mean), axis=-1, keepdims=True)
    xn = (h - mean) * jax.lax.rsqrt(var + 1e-6)
    shift = table_ref[0:1, :] + temb_rows                               # row 0 -> shift
    scale = table_ref[1:2, :] + temb_rows                               # row 1 -> scale
    y = (xn * (1.0 + scale) + shift).astype(jnp.bfloat16)
    out = (jnp.dot(y, w_f_ref[...], preferred_element_type=jnp.float32)
           + b_f_ref[...])                                              # (M, OUT_PAD)
    o_ref[...] = out.astype(o_ref.dtype)                                # unmasked, lane-dense store


# ------------------------------ params / init ------------------------------
def xavier_uniform(key, fan_in, fan_out):
    limit = jnp.sqrt(6.0 / (fan_in + fan_out))
    return jax.random.uniform(key, (fan_in, fan_out), jnp.float32, -limit, limit)


def init_params(key):
    ks = jax.random.split(key, 6)
    p = {}
    # input_proj (weights stored bf16 -- fed straight to the MXU)
    p["w_in"] = xavier_uniform(ks[0], IN_CH, MODEL_CH).astype(jnp.bfloat16)
    p["b_in"] = jnp.zeros((1, MODEL_CH), jnp.float32)
    # learned positional embedding, std=0.02
    p["pos"] = 0.02 * jax.random.normal(ks[1], (1, SEQ, MODEL_CH), jnp.float32)
    # TimestepEmbedding(256 -> MODEL_CH): linear_1, linear_2
    p["w_t1"] = xavier_uniform(ks[2], FREQ, MODEL_CH).astype(jnp.bfloat16)
    p["b_t1"] = jnp.zeros((1, MODEL_CH), jnp.float32)
    p["w_t2"] = xavier_uniform(ks[3], MODEL_CH, MODEL_CH).astype(jnp.bfloat16)
    p["b_t2"] = jnp.zeros((1, MODEL_CH), jnp.float32)
    # FinalLayer: scale_shift_table randn/sqrt(C); linear zero-initialised per reference.
    # Final weight/bias are stored lane-padded to OUT_PAD=128 so the kernel's output
    # store is unmasked; padding columns are zeros (reference init is zeros anyway).
    p["table"] = jax.random.normal(ks[4], (2, MODEL_CH), jnp.float32) / (MODEL_CH ** 0.5)
    p["w_f"] = jnp.zeros((MODEL_CH, OUT_PAD), jnp.bfloat16)
    p["b_f"] = jnp.zeros((1, OUT_PAD), jnp.float32)
    # TODO(synk): cond_embed (Z_CH->C) and time_proj (C->6C) weights omitted: their
    # outputs feed only the empty res_blocks, never the returned tensor.
    return p


def _cost_estimate(m, bsz):
    flops = 2 * (m * IN_CH * MODEL_CH            # input_proj
                 + bsz * FREQ * MODEL_CH         # timestep linear_1
                 + bsz * MODEL_CH * MODEL_CH     # timestep linear_2
                 + m * bsz * MODEL_CH            # one-hot temb broadcast
                 + m * MODEL_CH * OUT_PAD)       # final linear
    transcendentals = bsz * FREQ + bsz * MODEL_CH + HALF   # cos/sin + sigmoid + exp
    bytes_accessed = ((FREQ + MODEL_CH + IN_CH + OUT_PAD) * MODEL_CH * 2   # bf16 weights
                      + (m + 6) * MODEL_CH * 4                            # pos_bias/biases/table
                      + m * IN_CH * 4 + m * OUT_PAD * 4 + bsz * 4)        # x, out, t
    return pl.CostEstimate(flops=flops, transcendentals=transcendentals,
                           bytes_accessed=bytes_accessed)


# ------------------------------ forward wrapper ------------------------------
@jax.jit
def diffusion_decoder_forward(params, x, c, t):
    p = params
    bsz, seq, _ = x.shape
    m = bsz * seq
    x2 = x.reshape(m, IN_CH)                     # contiguous -> free reshape
    t2 = t.astype(jnp.float32).reshape(bsz, 1)
    # Pre-tiled (pos-embed + input_proj bias): removes a sublane concat + broadcast-add
    # from the kernel body; only 16 KiB of VMEM.
    pos_bias = jnp.tile(p["pos"].reshape(seq, MODEL_CH), (bsz, 1)) + p["b_in"]

    vmem = pl.BlockSpec(memory_space=pltpu.MemorySpace.VMEM)
    out_pad = pl.pallas_call(
        fused_decoder_kernel,
        out_shape=jax.ShapeDtypeStruct((m, OUT_PAD), jnp.float32),
        in_specs=[vmem] * 11,
        out_specs=vmem,
        cost_estimate=_cost_estimate(m, bsz),
    )(t2, x2, p["w_in"], pos_bias,
      p["w_t1"], p["b_t1"], p["w_t2"], p["b_t2"],
      p["table"], p["w_f"], p["b_f"])
    # TODO(synk): `c` (cond_embed input) and timestep_proj are dead compute while
    # res_blocks is empty; they are intentionally not computed.
    del c
    return out_pad[:, :OUT_CH].reshape(bsz, seq, OUT_CH)


if __name__ == "__main__":
    key = jax.random.PRNGKey(0)
    k_params, k_x, k_c, k_t = jax.random.split(key, 4)
    params = init_params(k_params)
    x = jax.random.normal(k_x, (B, SEQ, IN_CH), jnp.float32)
    c = jax.random.normal(k_c, (B, Z_CH), jnp.float32)
    t = jax.random.uniform(k_t, (B,), jnp.float32, 0.0, 1000.0)

    out = diffusion_decoder_forward(params, x, c, t)
    jax.block_until_ready(out)
    assert out.shape == (B, SEQ, OUT_CH)
    assert bool(jnp.all(jnp.isfinite(out)))
    print("KERNEL_OK")
</pallas_src>

<mosaic_0001>
module attributes {stable_mosaic.version = 11 : i64} {
  func.func @fused_decoder_kernel(%arg0: memref<2x1xf32, #tpu.memory_space<vmem>>, %arg1: memref<32x16xf32, #tpu.memory_space<vmem>>, %arg2: memref<16x128xbf16, #tpu.memory_space<vmem>>, %arg3: memref<32x128xf32, #tpu.memory_space<vmem>>, %arg4: memref<256x128xbf16, #tpu.memory_space<vmem>>, %arg5: memref<1x128xf32, #tpu.memory_space<vmem>>, %arg6: memref<128x128xbf16, #tpu.memory_space<vmem>>, %arg7: memref<1x128xf32, #tpu.memory_space<vmem>>, %arg8: memref<2x128xf32, #tpu.memory_space<vmem>>, %arg9: memref<128x128xbf16, #tpu.memory_space<vmem>>, %arg10: memref<1x128xf32, #tpu.memory_space<vmem>>, %arg11: memref<32x128xf32, #tpu.memory_space<vmem>>) attributes {dimension_semantics = [], scalar_prefetch = 0 : i64, scratch_operands = 0 : i64, tpu.core_type = #tpu.core_type<tc>} {
    %0 = tpu.iota {dimensions = array<i32: 1>} : vector<1x128xi32>
    %1 = arith.sitofp %0 : vector<1x128xi32> to vector<1x128xf32>
    %cst = arith.constant 1.000000e+04 : f32
    %2 = math.log %cst : f32
    %cst_0 = arith.constant 0.000000e+00 : f32
    %3 = arith.subf %cst_0, %2 : f32
    %cst_1 = arith.constant 1.280000e+02 : f32
    %4 = arith.divf %3, %cst_1 : f32
    %5 = vector.broadcast %4 : f32 to vector<1x128xf32>
    %6 = arith.mulf %1, %5 : vector<1x128xf32>
    %7 = math.exp %6 : vector<1x128xf32>
    %c0 = arith.constant 0 : index
    %c0_2 = arith.constant 0 : index
    %8 = vector.load %arg0[%c0, %c0_2] : memref<2x1xf32, #tpu.memory_space<vmem>>, vector<2x1xf32>
    %9 = vector.broadcast %8 : vector<2x1xf32> to vector<2x128xf32>
    %10 = vector.broadcast %7 : vector<1x128xf32> to vector<2x128xf32>
    %11 = arith.mulf %9, %10 : vector<2x128xf32>
    %12 = math.cos %11 : vector<2x128xf32>
    %13 = math.sin %11 : vector<2x128xf32>
    %14 = tpu.concatenate %12, %13 in 1 : vector<2x128xf32>, vector<2x128xf32> -> vector<2x256xf32>
    %15 = arith.truncf %14 : vector<2x256xf32> to vector<2x256xbf16>
    %c0_3 = arith.constant 0 : index
    %c0_4 = arith.constant 0 : index
    %16 = vector.load %arg4[%c0_3, %c0_4] : memref<256x128xbf16, #tpu.memory_space<vmem>>, vector<256x128xbf16>
    %cst_5 = arith.constant dense<0.000000e+00> : vector<2x128xf32>
    %17 = tpu.matmul %15, %16, %cst_5 {dimension_numbers = #tpu.dot_dimension_numbers<[1], [0], [0], [1], [0, 0, 1, 1], [], []>} : vector<2x256xbf16>, vector<256x128xbf16>, vector<2x128xf32> -> vector<2x128xf32>
    %c0_6 = arith.constant 0 : index
    %c0_7 = arith.constant 0 : index
    %18 = vector.load %arg5[%c0_6, %c0_7] : memref<1x128xf32, #tpu.memory_space<vmem>>, vector<1x128xf32>
    %19 = vector.broadcast %18 : vector<1x128xf32> to vector<2x128xf32>
    %20 = arith.addf %17, %19 : vector<2x128xf32>
    %21 = arith.negf %20 : vector<2x128xf32>
    %22 = math.exp %21 : vector<2x128xf32>
    %cst_8 = arith.constant 1.000000e+00 : f32
    %23 = vector.broadcast %cst_8 : f32 to vector<2x128xf32>
    %24 = arith.addf %23, %22 : vector<2x128xf32>
    %25 = arith.divf %23, %24 : vector<2x128xf32>
    %26 = arith.mulf %20, %25 : vector<2x128xf32>
    %27 = arith.truncf %26 : vector<2x128xf32> to vector<2x128xbf16>
    %c0_9 = arith.constant 0 : index
    %c0_10 = arith.constant 0 : index
    %28 = vector.load %arg6[%c0_9, %c0_10] : memref<128x128xbf16, #tpu.memory_space<vmem>>, vector<128x128xbf16>
    %cst_11 = arith.constant dense<0.000000e+00> : vector<2x128xf32>
    %29 = tpu.matmul %27, %28, %cst_11 {dimension_numbers = #tpu.dot_dimension_numbers<[1], [0], [0], [1], [0, 0, 1, 1], [], []>} : vector<2x128xbf16>, vector<128x128xbf16>, vector<2x128xf32> -> vector<2x128xf32>
    %c0_12 = arith.constant 0 : index
    %c0_13 = arith.constant 0 : index
    %30 = vector.load %arg7[%c0_12, %c0_13] : memref<1x128xf32, #tpu.memory_space<vmem>>, vector<1x128xf32>
    %31 = vector.broadcast %30 : vector<1x128xf32> to vector<2x128xf32>
    %32 = arith.addf %29, %31 : vector<2x128xf32>
    %c0_14 = arith.constant 0 : index
    %c0_15 = arith.constant 0 : index
    %33 = vector.load %arg1[%c0_14, %c0_15] : memref<32x16xf32, #tpu.memory_space<vmem>>, vector<32x16xf32>
    %34 = arith.truncf %33 : vector<32x16xf32> to vector<32x16xbf16>
    %c0_16 = arith.constant 0 : index
    %c0_17 = arith.constant 0 : index
    %35 = vector.load %arg2[%c0_16, %c0_17] : memref<16x128xbf16, #tpu.memory_space<vmem>>, vector<16x128xbf16>
    %cst_18 = arith.constant dense<0.000000e+00> : vector<32x128xf32>
    %36 = tpu.matmul %34, %35, %cst_18 {dimension_numbers = #tpu.dot_dimension_numbers<[1], [0], [0], [1], [0, 0, 1, 1], [], []>} : vector<32x16xbf16>, vector<16x128xbf16>, vector<32x128xf32> -> vector<32x128xf32>
    %c0_19 = arith.constant 0 : index
    %c0_20 = arith.constant 0 : index
    %37 = vector.load %arg3[%c0_19, %c0_20] : memref<32x128xf32, #tpu.memory_space<vmem>>, vector<32x128xf32>
    %38 = arith.addf %36, %37 : vector<32x128xf32>
    %39 = tpu.iota {dimensions = array<i32: 0>} : vector<32x2xi32>
    %40 = tpu.iota {dimensions = array<i32: 1>} : vector<32x2xi32>
    %c16_i32 = arith.constant 16 : i32
    %41 = vector.broadcast %c16_i32 : i32 to vector<32x2xi32>
    %42 = arith.muli %40, %41 : vector<32x2xi32>
    %43 = arith.cmpi sge, %39, %42 : vector<32x2xi32>
    %c1_i32 = arith.constant 1 : i32
    %44 = vector.broadcast %c1_i32 : i32 to vector<32x2xi32>
    %45 = arith.addi %40, %44 : vector<32x2xi32>
    %c16_i32_21 = arith.constant 16 : i32
    %46 = vector.broadcast %c16_i32_21 : i32 to vector<32x2xi32>
    %47 = arith.muli %45, %46 : vector<32x2xi32>
    %48 = arith.cmpi slt, %39, %47 : vector<32x2xi32>
    %49 = arith.andi %43, %48 : vector<32x2xi1>
    %50 = arith.extui %49 : vector<32x2xi1> to vector<32x2xi32>
    %51 = arith.sitofp %50 : vector<32x2xi32> to vector<32x2xf32>
    %52 = arith.truncf %51 : vector<32x2xf32> to vector<32x2xbf16>
    %53 = arith.truncf %32 : vector<2x128xf32> to vector<2x128xbf16>
    %cst_22 = arith.constant dense<0.000000e+00> : vector<32x128xf32>
    %54 = tpu.matmul %52, %53, %cst_22 {dimension_numbers = #tpu.dot_dimension_numbers<[1], [0], [0], [1], [0, 0, 1, 1], [], []>} : vector<32x2xbf16>, vector<2x128xbf16>, vector<32x128xf32> -> vector<32x128xf32>
    %cst_23 = arith.constant dense<0.000000e+00> : vector<32xf32>
    %55 = vector.multi_reduction <add>, %38, %cst_23 [1] : vector<32x128xf32> to vector<32xf32>
    %56 = vector.shape_cast %55 : vector<32xf32> to vector<32x1xf32>
    %cst_24 = arith.constant 1.280000e+02 : f32
    %57 = vector.broadcast %cst_24 : f32 to vector<32x1xf32>
    %58 = arith.divf %56, %57 : vector<32x1xf32>
    %59 = vector.broadcast %58 : vector<32x1xf32> to vector<32x128xf32>
    %60 = arith.subf %38, %59 : vector<32x128xf32>
    %61 = arith.mulf %60, %60 : vector<32x128xf32>
    %cst_25 = arith.constant dense<0.000000e+00> : vector<32xf32>
    %62 = vector.multi_reduction <add>, %61, %cst_25 [1] : vector<32x128xf32> to vector<32xf32>
    %63 = vector.shape_cast %62 : vector<32xf32> to vector<32x1xf32>
    %cst_26 = arith.constant 1.280000e+02 : f32
    %64 = vector.broadcast %cst_26 : f32 to vector<32x1xf32>
    %65 = arith.divf %63, %64 : vector<32x1xf32>
    %66 = vector.broadcast %58 : vector<32x1xf32> to vector<32x128xf32>
    %67 = arith.subf %38, %66 : vector<32x128xf32>
    %cst_27 = arith.constant 9.99999997E-7 : f32
    %68 = vector.broadcast %cst_27 : f32 to vector<32x1xf32>
    %69 = arith.addf %65, %68 : vector<32x1xf32>
    %70 = math.rsqrt %69 : vector<32x1xf32>
    %71 = vector.broadcast %70 : vector<32x1xf32> to vector<32x128xf32>
    %72 = arith.mulf %67, %71 : vector<32x128xf32>
    %c0_28 = arith.constant 0 : index
    %c0_29 = arith.constant 0 : index
    %73 = vector.load %arg8[%c0_28, %c0_29] : memref<2x128xf32, #tpu.memory_space<vmem>>, vector<1x128xf32>
    %74 = vector.broadcast %73 : vector<1x128xf32> to vector<32x128xf32>
    %75 = arith.addf %74, %54 : vector<32x128xf32>
    %c1 = arith.constant 1 : index
    %c0_30 = arith.constant 0 : index
    %76 = vector.load %arg8[%c1, %c0_30] : memref<2x128xf32, #tpu.memory_space<vmem>>, vector<1x128xf32>
    %77 = vector.broadcast %76 : vector<1x128xf32> to vector<32x128xf32>
    %78 = arith.addf %77, %54 : vector<32x128xf32>
    %cst_31 = arith.constant 1.000000e+00 : f32
    %79 = vector.broadcast %cst_31 : f32 to vector<32x128xf32>
    %80 = arith.addf %79, %78 : vector<32x128xf32>
    %81 = arith.mulf %72, %80 : vector<32x128xf32>
    %82 = arith.addf %81, %75 : vector<32x128xf32>
    %83 = arith.truncf %82 : vector<32x128xf32> to vector<32x128xbf16>
    %c0_32 = arith.constant 0 : index
    %c0_33 = arith.constant 0 : index
    %84 = vector.load %arg9[%c0_32, %c0_33] : memref<128x128xbf16, #tpu.memory_space<vmem>>, vector<128x128xbf16>
    %cst_34 = arith.constant dense<0.000000e+00> : vector<32x128xf32>
    %85 = tpu.matmul %83, %84, %cst_34 {dimension_numbers = #tpu.dot_dimension_numbers<[1], [0], [0], [1], [0, 0, 1, 1], [], []>} : vector<32x128xbf16>, vector<128x128xbf16>, vector<32x128xf32> -> vector<32x128xf32>
    %c0_35 = arith.constant 0 : index
    %c0_36 = arith.constant 0 : index
    %86 = vector.load %arg10[%c0_35, %c0_36] : memref<1x128xf32, #tpu.memory_space<vmem>>, vector<1x128xf32>
    %87 = vector.broadcast %86 : vector<1x128xf32> to vector<32x128xf32>
    %88 = arith.addf %85, %87 : vector<32x128xf32>
    %c0_37 = arith.constant 0 : index
    %c0_38 = arith.constant 0 : index
    %89 = vector.load %arg11[%c0_37, %c0_38] : memref<32x128xf32, #tpu.memory_space<vmem>>, vector<32x128xf32>
    tpu.vector_store %arg11[%c0_37, %c0_38], %88 {strides = array<i32>} : memref<32x128xf32, #tpu.memory_space<vmem>>, vector<32x128xf32>,
    return
  }
}

</mosaic_0001>

<bundles_post_ra>
// kernel: diffusion_decoder_forward.1
= control target key start
LH: loop header
LB: loop body
LE: loop exit
PB: predicated region body
PF: predicated region fallthrough
CT: control target
= control target key end

     0   :  { %16 = vsyncpa [#allocation3], 0  ;;  %s1604_s0 = inlined_call_operand.vmem [shape: f32[2,1], index: 0, kind: input, shape index: {}]   ;;  %s1605_s1 = inlined_call_operand.hbm [shape: f32[32,16], index: 1, kind: input, shape index: {}]   ;;  %s1606_s2 = inlined_call_operand.vmem [shape: bf16[16,128], index: 2, kind: input, shape index: {}]   ;;  %s1607_s3 = inlined_call_operand.vmem [shape: f32[32,128], index: 3, kind: input, shape index: {}]   ;;  %s1608_s4 = inlined_call_operand.vmem [shape: bf16[256,128], index: 4, kind: input, shape index: {}]   ;;  %s1609_s5 = inlined_call_operand.vmem [shape: f32[1,128], index: 5, kind: input, shape index: {}]   ;;  %s1610_s6 = inlined_call_operand.hbm [shape: bf16[128,128], index: 6, kind: input, shape index: {}]   ;;  %s1611_s7 = inlined_call_operand.hbm [shape: f32[1,128], index: 7, kind: input, shape index: {}]   ;;  %s1612_s8 = inlined_call_operand.vmem [shape: f32[2,128], index: 8, kind: input, shape index: {}]   ;;  %s1613_s9 = inlined_call_operand.hbm [shape: bf16[128,128], index: 9, kind: input, shape index: {}]   ;;  %s1614_s10 = inlined_call_operand.hbm [shape: f32[1,128], index: 10, kind: input, shape index: {}]   ;;  %s1615_s11 = inlined_call_operand.hbm [shape: f32[32,128], index: 11, kind: output, shape index: {}]  }
   0x1   :  { %17 = vsyncpa [#allocation6], 0 }
   0x2   :  { %18 = vsyncpa [#allocation9], 0 }
   0x3   :  { %19 = vsyncpa [#allocation4], 0  ;;  %s1363_s17 = smov [#allocation5]  }
   0x4   :  { %s47_s18 = sshll.u32 %s1363_s17, 4  ;;  %s48_s18 = int_to_ptr.vmem [resolvable:$true] %s47_s18 }
   0x5   :  { %s1243_s19 = scalar_lea.vmem %s48_s18, 1024  ;;  %p1248_p1 = scmp.lt.s32.totalorder %s48_s18, %s48_s18 }
   0x6   :  { %p1244_p0 = scmp.ne.s32.totalorder %s48_s18, %s1243_s19  ;;  %p1249_p2 = scmp.lt.s32.totalorder %s1243_s19, %s1243_s19 }
   0x8   :  { %p1250_p3 = por %p1249_p2, %p1248_p1 }
   0xa   :  { %p1251_p4 = pnand %p1250_p3, %p1244_p0 }
   0xc   :  { %1254 = shalt.err (!%p1251_p4)
}
   0xd   :  { %s1364_s20 = smov 64   ;;  %s1365_s21 = smov 4  }
   0xe   :  { %53 = dma.hbm_to_vmem [thread:$0]  %s1610_s6, 1024, %s48_s18, [#allocation6], %s1364_s20, %s1364_s20, %s1365_s21  }
   0xf   :  { %s1366_s24 = smov [#allocation8]   ;;  %s1367_s26 = smov [#allocation2]  }
  0x10   :  { %s71_s25 = sshll.u32 %s1366_s24, 4  ;;  %s27_s27 = sshll.u32 %s1367_s26, 4  ;;  %s72_s25 = int_to_ptr.vmem [resolvable:$true] %s71_s25  ;;  %s28_s27 = int_to_ptr.vmem [resolvable:$true] %s27_s27 }
  0x11   :  { %s1263_s28 = scalar_lea.vmem %s72_s25, 1024  ;;  %p1268_p6 = scmp.lt.s32.totalorder %s72_s25, %s72_s25 }
  0x12   :  { %p1264_p5 = scmp.ne.s32.totalorder %s72_s25, %s1263_s28  ;;  %p1269_p7 = scmp.lt.s32.totalorder %s1263_s28, %s1263_s28 }
  0x14   :  { %p1270_p8 = por %p1269_p7, %p1268_p6 }
  0x16   :  { %p1271_p9 = pnand %p1270_p8, %p1264_p5 }
  0x18   :  { %1274 = shalt.err (!%p1271_p9)
}
  0x19   :  { %77 = dma.hbm_to_vmem [thread:$0]  %s1613_s9, 1024, %s72_s25, [#allocation9], %s1364_s20, %s1364_s20, %s1365_s21  }
  0x1a   :  { %s1283_s12 = scalar_lea.vmem %s28_s27, 512  ;;  %p1288_p11 = scmp.lt.s32.totalorder %s28_s27, %s28_s27 }
  0x1b   :  { %p1284_p10 = scmp.ne.s32.totalorder %s28_s27, %s1283_s12  ;;  %p1289_p12 = scmp.lt.s32.totalorder %s1283_s12, %s1283_s12 }
  0x1d   :  { %p1290_p13 = por %p1289_p12, %p1288_p11 }
  0x1f   :  { %p1291_p0 = pnand %p1290_p13, %p1284_p10 }
  0x21   :  { %1294 = shalt.err (!%p1291_p0)
}
  0x22   :  { %s1368_s6 = smov 128   ;;  %s1369_s13 = smov 8  }
  0x23   :  { %33 = dma.hbm_to_vmem [thread:$0]  %s1605_s1, 512, %s28_s27, [#allocation3], %s1368_s6, %s1368_s6, %s1369_s13  }
  0x24   :  { %s1370_s16 = smov [#allocation7]   ;;  %s1371_s9 = smov [#allocation10]  }
  0x25   :  { %s60_s17 = sshll.u32 %s1370_s16, 4  ;;  %s84_s18 = sshll.u32 %s1371_s9, 4  ;;  %s61_s17 = int_to_ptr.vmem [resolvable:$true] %s60_s17  ;;  %s85_s18 = int_to_ptr.vmem [resolvable:$true] %s84_s18 }
  0x26   :  { %s1303_s19 = scalar_lea.vmem %s61_s17, 16  ;;  %s1307_s20 = scalar_lea.vmem %s61_s17, 32 }
  0x27   :  { %p1304_p1 = scmp.ne.s32.totalorder %s61_s17, %s1303_s19  ;;  %p1308_p2 = scmp.lt.s32.totalorder %s61_s17, %s61_s17 }
  0x28   :  { %p1309_p3 = scmp.lt.s32.totalorder %s1307_s20, %s1303_s19 }
  0x2a   :  { %p1310_p4 = por %p1309_p3, %p1308_p2 }
  0x2c   :  { %p1311_p5 = pnand %p1310_p4, %p1304_p1 }
  0x2e   :  { %1314 = shalt.err (!%p1311_p5)
}
  0x2f   :  { %63 = dma.hbm_to_vmem [thread:$0]  %s1611_s7, 16, %s61_s17, [#allocation6]  }
  0x30   :  { %s1323_s23 = scalar_lea.vmem %s85_s18, 16  ;;  %s1327_s1 = scalar_lea.vmem %s85_s18, 32 }
  0x31   :  { %p1324_p6 = scmp.ne.s32.totalorder %s85_s18, %s1323_s23  ;;  %p1328_p7 = scmp.lt.s32.totalorder %s85_s18, %s85_s18 }
  0x32   :  { %p1329_p8 = scmp.lt.s32.totalorder %s1327_s1, %s1323_s23 }
  0x34   :  { %p1330_p9 = por %p1329_p8, %p1328_p7 }
  0x36   :  { %p1331_p10 = pnand %p1330_p9, %p1324_p6 }
  0x38   :  { %1334 = shalt.err (!%p1331_p10)
}
  0x39   :  { %87 = dma.hbm_to_vmem [thread:$0]  %s1614_s10, 16, %s85_s18, [#allocation9]  }
  0x3a   :  { %1355 = dma.done.wait [#allocation3], 512  }
  0x3b   :  { %1356 = vsyncadd [#allocation3], 4294966784 }
  0x3c   :  { %1357 = dma.done.wait [#allocation6], 1040  }
  0x3d   :  { %1358 = vsyncadd [#allocation6], 4294966256 }
  0x3e   :  { %1359 = dma.done.wait [#allocation9], 1040  }
  0x3f   :  { %1360 = vsyncadd [#allocation9], 4294966256  ;;  %v1372_v0 = vmov 0   ;;  %v110_v1 = vld [vmem:[%s1604_s0] sm:$0x3]  ;;  %v1184_v2 = vld [vmem:[%s1608_s4 + $0x78] sm:$0xff]   ;;  %v104_v18 = vlaneseq }
  0x40   :  { %1183 = vset.pattern.permute.xlu0 %v1372_v0  ;;  %v1185_v3 = vld [vmem:[%s1608_s4 + $0x38] sm:$0xff]   ;;  %v1186_v4 = vld [vmem:[%s1608_s4 + $0x70] sm:$0xff]   ;;  %1060 = vmatprep.subr.bf16.mxu0 %v1184_v2  ;;  %v1188_v6 = vld [vmem:[%s1608_s4 + $0x68] sm:$0xff]   ;;  %v1373_v37 = vmov 2102212464  }
  0x41   :  { %113 = vperm.xlu0 %1183, %v110_v1   ;;  %1061 = vmatpush3.bf16.msra.mxu0 %v1185_v3  ;;  %v1187_v5 = vld [vmem:[%s1608_s4 + $0x30] sm:$0xff]   ;;  %v1189_v7 = vld [vmem:[%s1608_s4 + $0x28] sm:$0xff]   ;;  %v1190_v8 = vld [vmem:[%s1608_s4 + $0x60] sm:$0xff]   ;;  %v1512_v19 = vand.u32 127, %v104_v18  ;;  %v1374_v39 = vmov 920167782  }
  0x42   :  { %1062 = vmatprep.subr.bf16.mxu0 %v1186_v4  ;;  %v1191_v9 = vld [vmem:[%s1608_s4 + $0x20] sm:$0xff]   ;;  %v1192_v10 = vld [vmem:[%s1608_s4 + $0x58] sm:$0xff]   ;;  %v1194_v12 = vld [vmem:[%s1608_s4 + $0x50] sm:$0xff]   ;;  %v1375_v43 = vmov 1326507024  }
  0x43   :  { %v1193_v11 = vld [vmem:[%s1608_s4 + $0x18] sm:$0xff]   ;;  %v1195_v13 = vld [vmem:[%s1608_s4 + $0x10] sm:$0xff]   ;;  %v1196_v14 = vld [vmem:[%s1608_s4 + $0x48] sm:$0xff]   ;;  %v106_v20 = vcvt.s32.f32 %v1512_v19  ;;  %v1376_v45 = vmov 683565275  }
  0x44   :  { %v1197_v15 = vld [vmem:[%s1608_s4 + $0x8] sm:$0xff]   ;;  %v1198_v16 = vld [vmem:[%s1608_s4 + $0x40] sm:$0xff]   ;;  %v1377_v47 = vmov 2475754826   ;;  %v1378_v50 = vmov 2131351028  }
  0x45   :  { %1063 = vmatpush3.bf16.msra.mxu0 %v1187_v5  ;;  %v1199_v17 = vld [vmem:[%s1608_s4] sm:$0xff]   ;;  %v107_v21 = vmul.f32 -0.071955785, %v106_v20 }
  0x46   :  { %1064 = vmatprep.subr.bf16.mxu0 %v1188_v6 }
  0x47   :  { %v108_v22 = vmul.f32 1.442695, %v107_v21 }
  0x49   :  { %1065 = vmatpush3.bf16.msra.mxu0 %v1189_v7  ;;  %1217 = vpow2.f32 %v108_v22 }
  0x4a   :  { %1066 = vmatprep.subr.bf16.mxu0 %v1190_v8 }
  0x4d   :  { %1067 = vmatpush3.bf16.msra.mxu0 %v1191_v9 }
  0x4e   :  { %1068 = vmatprep.subr.bf16.mxu0 %v1192_v10 }
  0x51   :  { %1069 = vmatpush3.bf16.msra.mxu0 %v1193_v11 }
  0x52   :  { %1070 = vmatprep.subr.bf16.mxu0 %v1194_v12 }
  0x55   :  { %1071 = vmatpush3.bf16.msra.mxu0 %v1195_v13 }
  0x56   :  { %1072 = vmatprep.subr.bf16.mxu0 %v1196_v14  ;;  %v1218_v23 = vpop.eup %1217 }
  0x59   :  { %1073 = vmatpush3.bf16.msra.mxu0 %v1197_v15 }
  0x5a   :  { %1074 = vmatprep.subr.bf16.mxu0 %v1198_v16 }
  0x5d   :  { %1075 = vmatpush3.bf16.msra.mxu0 %v1199_v17 }
  0xbc   :  { %v114_v24 = vpop.permute.xlu0 %113 }
  0xbd   :  { %v1515_v25 = vmul.f32 %v1218_v23, %v114_v24 }
  0xbf   :  { %v120_v26 = vand.u32 2139095040, %v1515_v25  ;;  %v117_v27 = vand.u32 2147483647, %v1515_v25  ;;  %vm119_vm7 = vcmp.lt.s32.totalorder %v1515_v25, 0  ;;  %vm209_vm15 = vweird.f32 %v1515_v25 }
  0xc1   :  { %v121_v28 = vshrl.u32 %v120_v26, 23  ;;  %v124_v30 = vand.u32 8388607, %v117_v27  ;;  %vm118_vm8 = vcmp.le.f32.partialorder %v117_v27, 0.7853982 }
  0xc3   :  { %v1005_v29 = vadd.s32 4294967169, %v121_v28  ;;  %v125_v33 = vor.u32 8388608, %v124_v30 }
  0xc5   :  { %v127_v31 = vadd.s32 1, %v1005_v29  ;;  %v165_v41 = vshll.u32 %v125_v33, 8 }
  0xc7   :  { %vm128_vm0 = vcmp.gt.s32.totalorder %v127_v31, 0 }
  0xc8   :  { %v129_v32 = vsel %vm128_vm0, %v127_v31, 0  ;;  %vm1380_vm0 = vmmov 0  }
  0xc9   :  { %v131_v34 = vand.u32 31, %v129_v32  ;;  %v130_v35 = vshrl.u32 %v129_v32, 5 }
  0xcb   :  { %v132_v36 = vsub.s32 32, %v131_v34  ;;  %v143_v38 = vshll.u32 %v1373_v37, %v131_v34  ;;  %v146_v40 = vshll.u32 %v1374_v39, %v131_v34  ;;  %v134_v46 = vshll.u32 %v1376_v45, %v131_v34 }
  0xcc   :  { %v137_v49 = vshll.u32 %v1377_v47, %v131_v34  ;;  %v140_v52 = vshll.u32 %v1378_v50, %v131_v34  ;;  %vm152_vm1 = vcmp.lt.s32.totalorder %v130_v35, 4  ;;  %vm149_vm2 = vcmp.lt.s32.totalorder %v130_v35, 1 }
  0xcd   :  { %v144_v42 = vshrl.u32 %v1374_v39, %v132_v36  ;;  %v147_v44 = vshrl.u32 %v1375_v43, %v132_v36  ;;  %v135_v48 = vshrl.u32 %v1377_v47, %v132_v36  ;;  %v138_v51 = vshrl.u32 %v1378_v50, %v132_v36 }
  0xce   :  { %v141_v53 = vshrl.u32 %v1373_v37, %v132_v36  ;;  %v133_v57 = vshrl.u32 %v1376_v45, %v132_v36  ;;  %vm150_vm3 = vcmp.lt.s32.totalorder %v130_v35, 2  ;;  %vm151_vm4 = vcmp.lt.s32.totalorder %v130_v35, 3 }
  0xcf   :  { %v145_v54 = vor.u32 %v144_v42, %v143_v38  ;;  %v148_v55 = vor.u32 %v147_v44, %v146_v40  ;;  %v136_v56 = vor.u32 %v135_v48, %v134_v46  ;;  %v139_v58 = vor.u32 %v138_v51, %v137_v49 }
  0xd0   :  { %v142_v59 = vor.u32 %v141_v53, %v140_v52 }
  0xd1   :  { %v158_v60 = vsel %vm152_vm1, %v145_v54, 920167782  ;;  %v162_v61 = vsel %vm152_vm1, %v148_v55, 1326507024  ;;  %v157_v63 = vsel %vm149_vm2, %v136_v56, %v139_v58  ;;  %v153_v2 = vsel %vm149_vm2, %v133_v57, %v136_v56 }
  0xd2   :  { %v154_v62 = vsel %vm152_vm1, %v142_v59, 2102212464  ;;  %v159_v0 = vsel %vm151_vm4, %v142_v59, %v158_v60  ;;  %v161_v1 = vsel %vm149_vm2, %v139_v58, %v142_v59  ;;  %v163_v5 = vsel %vm151_vm4, %v145_v54, %v162_v61 }
  0xd3   :  { %v155_v3 = vsel %vm151_vm4, %v139_v58, %v154_v62  ;;  %v160_v4 = vsel %vm150_vm3, %v157_v63, %v159_v0  ;;  %v164_v6 = vsel %vm150_vm3, %v161_v1, %v163_v5  ;;  %v1200_v63 = vld [vmem:[#allocation5 + $0x38] sm:$0xff]   ;;  %v1379_v0 = vmov 0.0   ;;  %v1201_v1 = vld [vmem:[#allocation5 + $0x30] sm:$0xff]   ;;  %v1206_v5 = vld [vmem:[#allocation5 + $0x8] sm:$0xff]  }
  0xd4   :  { %v1521_v7 = vmul.u32.u64.low %v165_v41, %v160_v4  ;;  %v1522_v8 = vmul.u32.u64.high %v165_v41, %v160_v4, %v1521_v7  ;;  %v1524_v9 = vmul.u32.u64.low %v165_v41, %v164_v6  ;;  %v1525_v10 = vmul.u32.u64.high %v165_v41, %v164_v6, %v1524_v9  ;;  %1107 = vmatprep.subr.bf16.mxu1 %v1379_v0  ;;  %1123 = vmatprep.mubr.msk.bf16.mxu1 %vm1380_vm0, %v1379_v0  ;;  %v1205_v4 = vld [vmem:[#allocation5 + $0x10] sm:$0xff]   ;;  %v1207_v6 = vld [vmem:[#allocation5] sm:$0xff]  }
  0xd5   :  { %v156_v11 = vsel %vm150_vm3, %v153_v2, %v155_v3  ;;  %1108 = vmatpush3.bf16.msra.mxu1 %v1200_v63  ;;  %v1203_v2 = vld [vmem:[#allocation5 + $0x20] sm:$0xff]   ;;  %v1204_v3 = vld [vmem:[#allocation5 + $0x18] sm:$0xff]   ;;  %vm638_vm1 = vcmask 130048  }
  0xd6   :  { %v175_v12 = vadd.s32 1, %v1522_v8  ;;  %v172_v13 = vmul.u32 %v165_v41, %v156_v11  ;;  %vm174_vm5 = vc.u32 %v1525_v10, %v1521_v7  ;;  %v173_v29 = vadd.s32 %v1521_v7, %v1525_v10  ;;  %1109 = vmatprep.subr.bf16.mxu1 %v1379_v0  ;;  %v1208_v7 = vld [vmem:[%s1606_s2] sm:$0xff]  }
  0xd7   :  { %v1013_v9 = vld [vmem:[%s1609_s5] ss:$0 sm:$0xff] }
  0xd8   :  { %v176_v14 = vsel %vm174_vm5, %v175_v12, %v1522_v8 }
  0xd9   :  { %v177_v15 = vadd.s32 %v176_v14, %v172_v13  ;;  %1110 = vmatpush3.bf16.msra.mxu1 %v1201_v1 }
  0xda   :  { %1111 = vmatprep.subr.bf16.mxu1 %v1379_v0 }
  0xdb   :  { %v178_v16 = vadd.s32 536870912, %v177_v15 }
  0xdd   :  { %v179_v17 = vshrl.u32 %v178_v16, 30 }
  0xdf   :  { %v180_v20 = vshll.u32 %v179_v17, 30  ;;  %v203_v42 = vsub.s32 4, %v179_v17 }
  0xe1   :  { %v181_v21 = vsub.s32 %v177_v15, %v180_v20  ;;  %v204_v45 = vsel %vm119_vm7, %v203_v42, %v179_v17  ;;  %v620_v20 = vld [vmem:[#allocation2] sm:$0xff] }
  0xe2   :  { %v206_v46 = vsel %vm118_vm8, 0, %v204_v45  ;;  %v1031_v42 = vld [vmem:[#allocation7] ss:$0 sm:$0xff] }
  0xe3   :  { %v183_v22 = vsub.s32 0, %v181_v21  ;;  %v313_v47 = vadd.s32 3, %v206_v46  ;;  %v210_v48 = vand.u32 3, %v206_v46 }
  0xe5   :  { %v1006_v23 = vmin.u32 %v183_v22, %v181_v21  ;;  %v314_v49 = vand.u32 3, %v313_v47  ;;  %vm215_vm9 = vcmp.eq.s32.totalorder %v210_v48, 2  ;;  %vm212_vm11 = vcmp.eq.s32.totalorder %v210_v48, 0 }
  0xe6   :  { %vm211_vm13 = vcmp.lt.s32.totalorder %v210_v48, 2 }
  0xe7   :  { %v185_v24 = vclz %v1006_v23  ;;  %vm319_vm10 = vcmp.eq.s32.totalorder %v314_v49, 2  ;;  %vm316_vm12 = vcmp.eq.s32.totalorder %v314_v49, 0  ;;  %vm315_vm14 = vcmp.lt.s32.totalorder %v314_v49, 2 }
  0xe9   :  { %v1007_v26 = vadd.s32 4294967294, %v185_v24 }
  0xeb   :  { %vm1008_vm6 = vcmp.lt.s32.totalorder %v1007_v26, 0 }
  0xec   :  { %v188_v28 = vsel %vm1008_vm6, 0, %v1007_v26 }
  0xed   :  { %v189_v30 = vsub.s32 32, %v188_v28  ;;  %v193_v31 = vsub.s32 4294967266, %v188_v28  ;;  %v190_v32 = vshll.u32 %v181_v21, %v188_v28  ;;  %v621_v21 = vld [vmem:[#allocation2 + $0x8] sm:$0xff]  ;;  %v622_v28 = vld [vmem:[#allocation2 + $0x10] sm:$0xff] }
  0xee   :  { %v624_v24 = vpack.c.bf16 %v621_v21, %v620_v20  ;;  %v1215_v20 = vld [vmem:[#allocation8 + $0x8] sm:$0xff]   ;;  %v1216_v21 = vld [vmem:[#allocation8] sm:$0xff]  }
  0xef   :  { %v191_v33 = vshrl.u32 %v173_v29, %v189_v30  ;;  %v194_v34 = vadd.s32 127, %v193_v31  ;;  %v623_v29 = vld [vmem:[#allocation2 + $0x18] sm:$0xff]  ;;  %v695_v31 = vshrl.u32 %v104_v18, 7 }
  0xf0   :  { %v625_v30 = vpack.c.bf16 %v623_v29, %v622_v28 }
  0xf1   :  { %v192_v35 = vor.u32 %v191_v33, %v190_v32  ;;  %v195_v36 = vshll.u32 %v194_v34, 23  ;;  %v699_v32 = vmul.u32 16, %v1512_v19  ;;  %v704_v33 = vadd.s32 1, %v1512_v19 }
  0xf2   :  { %v696_v34 = vadd.s32 8, %v695_v31 }
  0xf3   :  { %v196_v37 = vor.u32 4788187, %v195_v36  ;;  %v199_v39 = vcvt.s32.f32 %v192_v35  ;;  %vm700_vm2 = vcmp.ge.s32.totalorder %v695_v31, %v699_v32  ;;  %v705_v35 = vmul.u32 16, %v704_v33 }
  0xf4   :  { %v697_v36 = vadd.s32 16, %v695_v31  ;;  %vm701_vm3 = vcmp.ge.s32.totalorder %v696_v34, %v699_v32 }
  0xf5   :  { %v197_v38 = vand.u32 2147483647, %v196_v37  ;;  %v698_v37 = vadd.s32 24, %v695_v31  ;;  %vm706_vm4 = vcmp.lt.s32.totalorder %v695_v31, %v705_v35  ;;  %vm707_vm5 = vcmp.lt.s32.totalorder %v696_v34, %v705_v35 }
  0xf6   :  { %vm702_vm6 = vcmp.ge.s32.totalorder %v697_v36, %v699_v32 }
  0xf7   :  { %v200_v40 = vmul.f32 %v199_v39, %v197_v38 }
  0xf9   :  { %v201_v41 = vxor.u32 2147483648, %v200_v40 }
  0xfb   :  { %v202_v43 = vsel %vm119_vm7, %v201_v41, %v200_v40  ;;  %vm710_vm7 = vmand %vm700_vm2, %vm706_vm4 }
  0xfc   :  { %v205_v44 = vsel %vm118_vm8, %v1515_v25, %v202_v43  ;;  %v1202_v25 = vld [vmem:[#allocation5 + $0x28] sm:$0xff]   ;;  %vm703_vm8 = vcmp.ge.s32.totalorder %v698_v37, %v699_v32  ;;  %v1043_v18 = vsel %vm710_vm7, 1.0, %v1379_v0 }
  0xfd   :  { %1219 = vcosq.f32 %v205_v44  ;;  %1112 = vmatpush3.bf16.msra.mxu1 %v1202_v25 }
  0xfe   :  { %1221 = vsinq.f32 %v205_v44  ;;  %1113 = vmatprep.subr.bf16.mxu1 %v1379_v0 }
 0x101   :  { %1114 = vmatpush3.bf16.msra.mxu1 %v1203_v2 }
 0x102   :  { %1115 = vmatprep.subr.bf16.mxu1 %v1379_v0 }
 0x105   :  { %1116 = vmatpush3.bf16.msra.mxu1 %v1204_v3 }
 0x106   :  { %1117 = vmatprep.subr.bf16.mxu1 %v1379_v0 }
 0x109   :  { %1118 = vmatpush3.bf16.msra.mxu1 %v1205_v4 }
 0x10a   :  { %v1220_v50 = vpop.eup %1219  ;;  %1119 = vmatprep.subr.bf16.mxu1 %v1379_v0 }
 0x10b   :  { %v1222_v51 = vpop.eup %1221  ;;  %v216_v52 = vxor.u32 2147483648, %v1220_v50 }
 0x10c   :  { %v213_v53 = vxor.u32 2147483648, %v1222_v51 }
 0x10d   :  { %v217_v54 = vsel %vm215_vm9, %v216_v52, %v1222_v51  ;;  %v321_v27 = vsel %vm319_vm10, %v216_v52, %v1222_v51  ;;  %1120 = vmatpush3.bf16.msra.mxu1 %v1206_v5  ;;  %vm708_vm9 = vcmp.lt.s32.totalorder %v697_v36, %v705_v35  ;;  %vm709_vm10 = vcmp.lt.s32.totalorder %v698_v37, %v705_v35  ;;  %v628_v52 = vld [vmem:[%s1607_s3] sm:$0xff] }
 0x10e   :  { %v214_v55 = vsel %vm212_vm11, %v1220_v50, %v213_v53  ;;  %v318_v56 = vsel %vm316_vm12, %v1220_v50, %v213_v53  ;;  %1121 = vmatprep.subr.bf16.mxu1 %v1379_v0  ;;  %vm711_vm11 = vmand %vm701_vm3, %vm707_vm5  ;;  %vm725_vm12 = vcmask 15360   ;;  %v630_v50 = vld [vmem:[%s1607_s3 + $0x10] sm:$0xff] }
 0x10f   :  { %v218_v57 = vsel %vm211_vm13, %v214_v55, %v217_v54  ;;  %v322_v58 = vsel %vm315_vm14, %v318_v56, %v321_v27  ;;  %v1044_v38 = vsel %vm711_vm11, 1.0, %v1379_v0  ;;  %vm712_vm13 = vmand %vm702_vm6, %vm708_vm9  ;;  %v629_v56 = vld [vmem:[%s1607_s3 + $0x8] sm:$0xff] }
 0x110   :  { %v219_v59 = vsel %vm209_vm15, nan, %v218_v57  ;;  %v323_v60 = vsel %vm209_vm15, nan, %v322_v58  ;;  %v722_v19 = vpack.c.bf16 %v1044_v38, %v1043_v18  ;;  %vm713_vm14 = vmand %vm703_vm8, %vm709_vm10  ;;  %v1045_v39 = vsel %vm712_vm13, 1.0, %v1379_v0  ;;  %v1050_v38 = vld [vmem:[%s1612_s8 + $0x1] ss:$0 sm:$0xff] }
 0x111   :  { %v324_v61 = vpack.c.bf16 %v219_v59, %v219_v59  ;;  %v325_v62 = vpack.c.bf16 %v323_v60, %v323_v60  ;;  %1122 = vmatpush3.bf16.msra.mxu1 %v1207_v6  ;;  %v1046_v40 = vsel %vm713_vm14, 1.0, %v1379_v0  ;;  %vm732_vm15 = vcmask 1040384   ;;  %v631_v59 = vld [vmem:[%s1607_s3 + $0x18] sm:$0xff] }
 0x112   :  { %1127 = vmatprep.subr.bf16.mxu1 %v1208_v7  ;;  %v723_v41 = vpack.c.bf16 %v1046_v40, %v1045_v39 }
 0x113   :  { %493 = vmatprep.mubr.bf16.mxu0 %v325_v62 }
 0x114   :  { %494 = vmatmul.mubr.bf16.vlgmr.msra.gmra.mxu0 %v324_v61 }
 0x1d4   :  { %v1076_v8 = vpop.f32.mrf.mxu0 }
 0x1d6   :  { %v1077_v10 = vpop.f32.mrf.mxu0 }
 0x1d7   :  { %v1078_v11 = vadd.f32 %v1077_v10, %v1076_v8 }
 0x1d8   :  { %v1079_v12 = vpop.f32.mrf.mxu0 }
 0x1d9   :  { %v496_v13 = vadd.f32 %v1078_v11, %v1013_v9  ;;  %v1209_v12 = vld [vmem:[#allocation8 + $0x38] sm:$0xff]  }
 0x1da   :  { %v1080_v14 = vpop.f32.mrf.mxu0  ;;  %1139 = vmatprep.subr.bf16.mxu0 %v1209_v12 }
 0x1db   :  { %v1030_v15 = vmul.f32 -1.442695, %v496_v13  ;;  %1140 = vmatpush3.bf16.msra.mxu0 %v1209_v12  ;;  %v1211_v14 = vld [vmem:[#allocation8 + $0x28] sm:$0xff]  }
 0x1dd   :  { %1223 = vpow2.f32 %v1030_v15  ;;  %v1212_v15 = vld [vmem:[#allocation8 + $0x20] sm:$0xff]  }
 0x1ea   :  { %v1224_v16 = vpop.eup %1223 }
 0x1eb   :  { %v504_v17 = vadd.f32 1.0, %v1224_v16  ;;  %v1213_v16 = vld [vmem:[#allocation8 + $0x18] sm:$0xff]  }
 0x1ed   :  { %1225 = vrcp.f32 %v504_v17  ;;  %v1214_v17 = vld [vmem:[#allocation8 + $0x10] sm:$0xff]  }
 0x1fa   :  { %v1226_v22 = vpop.eup %1225 }
 0x1fb   :  { %v507_v23 = vmul.f32 %v1226_v22, %v496_v13  ;;  %v1210_v13 = vld [vmem:[#allocation8 + $0x30] sm:$0xff]  }
 0x1fc   :  { %1141 = vmatprep.subr.bf16.mxu0 %v1210_v13 }
 0x1fd   :  { %v508_v26 = vpack.c.bf16 %v507_v23, %v507_v23  ;;  %1142 = vmatpush3.bf16.msra.mxu0 %v1210_v13 }
 0x1fe   :  { %1143 = vmatprep.subr.bf16.mxu0 %v1211_v14 }
 0x1ff   :  { %1124 = vmatmul.mubr.bf16.vlgmr.msra.gmra.mxu1 %v508_v26 }
 0x200   :  { %1128 = vmatpush3.bf16.msra.mxu1 %v1208_v7  ;;  %1129 = vmatprep.mubr.msk.bf16.mxu1 %vm638_vm1, %v624_v24 }
 0x201   :  { %1144 = vmatpush3.bf16.msra.mxu0 %v1211_v14 }
 0x202   :  { %1145 = vmatprep.subr.bf16.mxu0 %v1212_v15 }
 0x205   :  { %1146 = vmatpush3.bf16.msra.mxu0 %v1212_v15 }
 0x206   :  { %1147 = vmatprep.subr.bf16.mxu0 %v1213_v16 }
 0x207   :  { %1130 = vmatmul.mubr.msk.bf16.vlgmr.msra.gmra.mxu1 %vm638_vm1, %v625_v30 }
 0x208   :  { %1135 = vmatprep.mubr.msk.bf16.mxu1 %vm725_vm12, %v722_v19 }
 0x209   :  { %1148 = vmatpush3.bf16.msra.mxu0 %v1213_v16 }
 0x20a   :  { %1149 = vmatprep.subr.bf16.mxu0 %v1214_v17 }
 0x20d   :  { %1150 = vmatpush3.bf16.msra.mxu0 %v1214_v17 }
 0x20e   :  { %1151 = vmatprep.subr.bf16.mxu0 %v1215_v20 }
 0x211   :  { %1152 = vmatpush3.bf16.msra.mxu0 %v1215_v20 }
 0x212   :  { %1153 = vmatprep.subr.bf16.mxu0 %v1216_v21 }
 0x215   :  { %1154 = vmatpush3.bf16.msra.mxu0 %v1216_v21 }
 0x2bf   :  { %v614_v43 = vpop.f32.mrf.mxu1 }
 0x2c0   :  { %v615_v44 = vadd.f32 %v1031_v42, %v614_v43 }
 0x2c1   :  { %v1125_v45 = vpop.f32.mrf.mxu1 }
 0x2c2   :  { %v724_v46 = vpack.c.bf16 %v615_v44, %v615_v44 }
 0x2c3   :  { %v617_v47 = vpop.f32.mrf.mxu1 }
 0x2c4   :  { %v734_v48 = vsel %vm732_vm15, %v724_v46, 0  ;;  %1159 = vmatprep.subr.msk.bf16.mxu1 %vm732_vm15, %v724_v46  ;;  %v1049_v47 = vld [vmem:[%s1612_s8] ss:$0 sm:$0xff]  ;;  %s1381_s8 = smov [#allocation11]  }
 0x2c5   :  { %v1126_v49 = vpop.f32.mrf.mxu1  ;;  %1134 = vmatpush3.bf16.msra.mxu1 %v734_v48  ;;  %s991_s7 = sshll.u32 %s1381_s8, 4  ;;  %s992_s7 = int_to_ptr.vmem [resolvable:$true] %s991_s7 }
 0x2c6   :  { %s1335_s26 = scalar_lea.vmem %s992_s7, 512  ;;  %p1340_p12 = scmp.lt.s32.totalorder %s992_s7, %s992_s7 }
 0x2c7   :  { %v1131_v51 = vpop.f32.mrf.mxu1  ;;  %p1336_p11 = scmp.ne.s32.totalorder %s992_s7, %s1335_s26  ;;  %p1341_p13 = scmp.lt.s32.totalorder %s1335_s26, %s1335_s26 }
 0x2c8   :  { %v688_v53 = vadd.f32 %v1131_v51, %v630_v50  ;;  %1136 = vmatmul.mubr.msk.bf16.vlgmr.msra.gmra.mxu1 %vm725_vm12, %v723_v41 }
 0x2c9   :  { %v679_v54 = vpop.f32.mrf.mxu1  ;;  %p1342_p0 = por %p1341_p13, %p1340_p12 }
 0x2ca   :  { %v680_v27 = vadd.f32 %v679_v54, %v628_v52  ;;  %789 = vadd.xlane.f32.xlu1 %v688_v53 }
 0x2cb   :  { %v1132_v55 = vpop.f32.mrf.mxu1  ;;  %p1343_p1 = pnand %p1342_p0, %p1336_p11 }
 0x2cc   :  { %785 = vadd.xlane.f32.xlu0 %v680_v27  ;;  %v691_v60 = vadd.f32 %v1132_v55, %v631_v59 }
 0x2cd   :  { %v682_v57 = vpop.f32.mrf.mxu1 }
 0x2ce   :  { %v683_v58 = vadd.f32 %v682_v57, %v629_v56 }
 0x2d0   :  { %787 = vadd.xlane.f32.xlu1 %v683_v58 }
 0x2d4   :  { %791 = vadd.xlane.f32.xlu1 %v691_v60 }
 0x353   :  { %v790_v61 = vpop.xlane.xlu1 %789 }
 0x354   :  { %v796_v62 = vmul.f32 0.0078125, %v790_v61 }
 0x355   :  { %v786_v63 = vpop.xlane.xlu0 %785 }
 0x356   :  { %v1572_v0 = vsub.f32 %v688_v53, %v796_v62  ;;  %v794_v1 = vmul.f32 0.0078125, %v786_v63 }
 0x358   :  { %v1574_v25 = vsub.f32 %v680_v27, %v794_v1  ;;  %v804_v2 = vmul.f32 %v1572_v0, %v1572_v0 }
 0x359   :  { %v788_v3 = vpop.xlane.xlu1 %787 }
 0x35a   :  { %v795_v4 = vmul.f32 0.0078125, %v788_v3  ;;  %810 = vadd.xlane.f32.xlu1 %v804_v2  ;;  %v802_v6 = vmul.f32 %v1574_v25, %v1574_v25 }
 0x35c   :  { %v1578_v5 = vsub.f32 %v683_v58, %v795_v4  ;;  %v1051_v4 = vld [vmem:[#allocation10] ss:$0 sm:$0xff] }
 0x35d   :  { %v792_v7 = vpop.xlane.xlu1 %791 }
 0x35e   :  { %v797_v8 = vmul.f32 0.0078125, %v792_v7  ;;  %806 = vadd.xlane.f32.xlu1 %v802_v6  ;;  %v803_v10 = vmul.f32 %v1578_v5, %v1578_v5 }
 0x360   :  { %v1582_v9 = vsub.f32 %v691_v60, %v797_v8 }
 0x362   :  { %808 = vadd.xlane.f32.xlu1 %v803_v10  ;;  %v805_v11 = vmul.f32 %v1582_v9, %v1582_v9 }
 0x366   :  { %812 = vadd.xlane.f32.xlu1 %v805_v11 }
 0x388   :  { %v1137_v31 = vpop.f32.mrf.mxu1 }
 0x389   :  { %v846_v41 = vadd.f32 %v1137_v31, %v1050_v38  ;;  %v837_v57 = vadd.f32 %v1137_v31, %v1049_v47 }
 0x38a   :  { %v770_v35 = vpop.f32.mrf.mxu1 }
 0x38b   :  { %v844_v19 = vadd.f32 %v1050_v38, %v770_v35  ;;  %v850_v48 = vadd.f32 1.0, %v846_v41  ;;  %v835_v54 = vadd.f32 %v1049_v47, %v770_v35 }
 0x38c   :  { %v1138_v18 = vpop.f32.mrf.mxu1 }
 0x38d   :  { %v848_v43 = vadd.f32 1.0, %v844_v19  ;;  %v847_v49 = vadd.f32 %v1138_v18, %v1050_v38  ;;  %v838_v63 = vadd.f32 %v1138_v18, %v1049_v47 }
 0x38e   :  { %v773_v39 = vpop.f32.mrf.mxu1 }
 0x38f   :  { %v845_v44 = vadd.f32 %v1050_v38, %v773_v39  ;;  %v836_v27 = vadd.f32 %v1049_v47, %v773_v39  ;;  %v851_v58 = vadd.f32 1.0, %v847_v49 }
 0x391   :  { %v849_v53 = vadd.f32 1.0, %v845_v44 }
 0x3e3   :  { %v811_v22 = vpop.xlane.xlu1 %810 }
 0x3e4   :  { %v816_v23 = vmul.f32 0.0078125, %v811_v22 }
 0x3e6   :  { %v820_v28 = vadd.f32 1e-06, %v816_v23 }
 0x3e7   :  { %v807_v24 = vpop.xlane.xlu1 %806 }
 0x3e8   :  { %v814_v26 = vmul.f32 0.0078125, %v807_v24 }
 0x3ea   :  { %v818_v29 = vadd.f32 1e-06, %v814_v26 }
 0x3eb   :  { %v809_v30 = vpop.xlane.xlu1 %808 }
 0x3ec   :  { %1227 = vrsqrt.f32 %v818_v29  ;;  %v815_v32 = vmul.f32 0.0078125, %v809_v30 }
 0x3ed   :  { %1229 = vrsqrt.f32 %v820_v28 }
 0x3ee   :  { %v819_v33 = vadd.f32 1e-06, %v815_v32 }
 0x3ef   :  { %v813_v34 = vpop.xlane.xlu1 %812 }
 0x3f0   :  { %1231 = vrsqrt.f32 %v819_v33  ;;  %v817_v36 = vmul.f32 0.0078125, %v813_v34 }
 0x3f2   :  { %v821_v37 = vadd.f32 1e-06, %v817_v36 }
 0x3f4   :  { %1233 = vrsqrt.f32 %v821_v37 }
 0x3f9   :  { %v1228_v40 = vpop.eup %1227 }
 0x3fa   :  { %v826_v42 = vmul.f32 %v1228_v40, %v1574_v25  ;;  %v1230_v45 = vpop.eup %1229 }
 0x3fb   :  { %v828_v50 = vmul.f32 %v1230_v45, %v1572_v0 }
 0x3fc   :  { %v852_v51 = vmul.f32 %v848_v43, %v826_v42 }
 0x3fd   :  { %v1232_v46 = vpop.eup %1231  ;;  %v854_v59 = vmul.f32 %v850_v48, %v828_v50 }
 0x3fe   :  { %v827_v52 = vmul.f32 %v1232_v46, %v1578_v5  ;;  %v856_v60 = vadd.f32 %v852_v51, %v835_v54 }
 0x3ff   :  { %v858_v2 = vadd.f32 %v854_v59, %v837_v57 }
 0x400   :  { %v853_v55 = vmul.f32 %v849_v53, %v827_v52 }
 0x401   :  { %v1234_v56 = vpop.eup %1233 }
 0x402   :  { %v829_v61 = vmul.f32 %v1234_v56, %v1582_v9  ;;  %v857_v62 = vadd.f32 %v853_v55, %v836_v27 }
 0x404   :  { %v855_v1 = vmul.f32 %v851_v58, %v829_v61  ;;  %v860_v25 = vpack.c.bf16 %v857_v62, %v856_v60 }
 0x406   :  { %v859_v0 = vadd.f32 %v855_v1, %v838_v63  ;;  %1155 = vmatprep.mubr.bf16.mxu0 %v860_v25 }
 0x408   :  { %v861_v3 = vpack.c.bf16 %v859_v0, %v858_v2 }
 0x40a   :  { %1156 = vmatmul.mubr.bf16.vlgmr.msra.gmra.mxu0 %v861_v3 }
 0x4ca   :  { %v1157_v5 = vpop.f32.mrf.mxu0 }
 0x4cb   :  { %v976_v6 = vadd.f32 %v1157_v5, %v1051_v4 }
 0x4cc   :  { %v967_v7 = vpop.f32.mrf.mxu0 }
 0x4cd   :  { %984 = vst [vmem:[#allocation11 + $0x10] sm:$0xff] %v976_v6  ;;  %v968_v8 = vadd.f32 %v1051_v4, %v967_v7 }
 0x4ce   :  { %v1158_v10 = vpop.f32.mrf.mxu0 }
 0x4cf   :  { %982 = vst [vmem:[#allocation11] sm:$0xff] %v968_v8  ;;  %v979_v9 = vadd.f32 %v1158_v10, %v1051_v4 }
 0x4d0   :  { %v970_v11 = vpop.f32.mrf.mxu0 }
 0x4d1   :  { %985 = vst [vmem:[#allocation11 + $0x18] sm:$0xff] %v979_v9  ;;  %v971_v12 = vadd.f32 %v1051_v4, %v970_v11 }
 0x4d3   :  { %983 = vst [vmem:[#allocation11 + $0x8] sm:$0xff] %v971_v12 }
 0x4d4   :  { %1346 = shalt.err (!%p1343_p1)
}
 0x4d5   :  { %997 = dma.vmem_to_hbm [thread:$0]  %s992_s7, 512, %s1615_s11, [#allocation4], %s1368_s6, %s1368_s6, %s1369_s13  }
 0x4d6   :  { %1361 = dma.done.wait [#allocation4], 512  }
 0x4d7   :  { %1362 = vsyncadd [#allocation4], 4294966784 }
 0x4d8   :  { %1001 = vsyncpa [#allocation3], 1 }
 0x4d9   :  { %1002 = vsyncpa [#allocation6], 1 }
 0x4da   :  { %1003 = vsyncpa [#allocation9], 1 }
 0x4db   :  { %1004 = vsyncpa [#allocation4], 1 }

</bundles_post_ra>
